<compile_context>
chip_gen: v5e
topology: v5e:2x2
jax: 0.10.0
libtpu: 0.0.40
codegen_flags: <defaults>
</compile_context>

<pallas_src>
import jax
import jax.numpy as jnp
from jax.experimental import pallas as pl
from jax.experimental.pallas import tpu as pltpu

THRESHOLD = 1.0
LANE = 128


# ----------------------------------------------------------------------------- kernels
def _huber_tile(yt, yp, *, tm, steps, rows, needs_mask):
    """Branch-free Huber loss on one (tm, LANE) tile.

    Returns (loss, mask) where mask marks entries that contribute (finite AND inside the
    real data rows). Non-contributing entries have loss exactly 0.
    """
    yt = yt.astype(jnp.float32)
    yp = yp.astype(jnp.float32)
    m = jnp.isfinite(yt) & jnp.isfinite(yp)
    if needs_mask:
        # Global (logical) row index of each sublane in this tile; rows beyond the real
        # data (boundary / over-covered blocks) are masked out.
        row0 = (pl.program_id(0) * steps + pl.program_id(1)) * tm
        rid = row0 + jax.lax.broadcasted_iota(jnp.int32, yt.shape, 0)
        m = m & (rid < rows)
    err = jnp.where(m, yp - yt, 0.0)
    abs_err = jnp.abs(err)
    c = jnp.minimum(abs_err, THRESHOLD)
    # |e| <  t : 0.5*e^2              (c == |e|)
    # |e| >= t : t*|e| - 0.5*t^2      (c == t)
    loss = 0.5 * c * c + THRESHOLD * (abs_err - c)
    return loss, m


def _make_mean_kernel(tm, steps, rows, needs_mask):
    def kernel(yt_ref, yp_ref, loss_out, cnt_out, acc, cnt):
        s = pl.program_id(1)

        @pl.when(s == 0)
        def _():
            acc[...] = jnp.zeros_like(acc)
            cnt[...] = jnp.zeros_like(cnt)

        loss, m = _huber_tile(yt_ref[...], yp_ref[...], tm=tm, steps=steps,
                              rows=rows, needs_mask=needs_mask)
        acc[...] += loss
        cnt[...] += m.astype(jnp.float32)

        @pl.when(s == steps - 1)
        def _():
            # Single sublane reduce per partial; only (1, 128) per output goes to HBM.
            loss_out[...] = jnp.sum(acc[...], axis=0, keepdims=True)[None]
            cnt_out[...] = jnp.sum(cnt[...], axis=0, keepdims=True)[None]

    return kernel


def _make_weighted_kernel(tm, steps, rows, needs_mask):
    def kernel(yt_ref, yp_ref, w_ref, loss_out, acc):
        s = pl.program_id(1)

        @pl.when(s == 0)
        def _():
            acc[...] = jnp.zeros_like(acc)

        loss, m = _huber_tile(yt_ref[...], yp_ref[...], tm=tm, steps=steps,
                              rows=rows, needs_mask=needs_mask)
        # Select guards against garbage weights in masked (out-of-data) regions.
        acc[...] += jnp.where(m, loss * w_ref[...], 0.0)

        @pl.when(s == steps - 1)
        def _():
            loss_out[...] = jnp.sum(acc[...], axis=0, keepdims=True)[None]

    return kernel


# ----------------------------------------------------------------------------- wrapper
def _flat_lane_view(x, total, pad_value):
    """(N, C) -> lane-dense (rows, 128) view; a pure reshape (no copy) when total % 128 == 0."""
    flat = x.reshape(-1)
    rem = total % LANE
    if rem:
        flat = jnp.pad(flat, (0, LANE - rem), constant_values=pad_value)
    return flat.reshape(-1, LANE)


def _tiling(rows, block_rows, num_partials):
    block_rows = max(8, (block_rows // 8) * 8)
    np_ = max(1, min(num_partials, pl.cdiv(rows, 8)))
    if rows < 8:
        tm = rows  # block dim equals full array dim -> allowed even when < 8
    else:
        tm = max(8, min(block_rows, 8 * pl.cdiv(pl.cdiv(rows, np_), 8)))
    steps = pl.cdiv(rows, np_ * tm)
    n_blocks = pl.cdiv(rows, tm)
    needs_mask = (np_ * steps * tm) != rows
    return np_, tm, steps, n_blocks, needs_mask


def labeled_loss(lb_pred, y_train_lb, sample_weight=None, *,
                 block_rows=512, num_partials=2):
    """Pallas implementation of LabeledLoss.forward(lb_pred, y_train_lb, sample_weight)."""
    N, C = lb_pred.shape
    assert y_train_lb.shape == (N, C)
    yp = lb_pred if jnp.issubdtype(lb_pred.dtype, jnp.floating) else lb_pred.astype(jnp.float32)
    yt = y_train_lb if jnp.issubdtype(y_train_lb.dtype, jnp.floating) else y_train_lb.astype(jnp.float32)

    total = N * C
    # NaN padding only for a ragged (<128 element) tail -> padded entries are non-finite
    # -> contribute 0 loss and 0 count.
    yp2 = _flat_lane_view(yp, total, jnp.nan)
    yt2 = _flat_lane_view(yt, total, jnp.nan)
    rows = yp2.shape[0]

    np_, tm, steps, n_blocks, needs_mask = _tiling(rows, block_rows, num_partials)
    last_block = n_blocks - 1

    def data_map(p, s):
        # Clamp so over-covered grid steps still point at an in-bounds block; those steps
        # are fully removed by the row mask inside the kernel.
        return (jnp.minimum(p * steps + s, last_block), 0)

    data_spec = pl.BlockSpec((tm, LANE), data_map)
    out_spec = pl.BlockSpec((1, 1, LANE), lambda p, s: (p, 0, 0))
    grid = (np_, steps)
    cparams = pltpu.CompilerParams(dimension_semantics=("parallel", "arbitrary"))
    elem_bytes = yp2.dtype.itemsize + yt2.dtype.itemsize

    if sample_weight is None:
        loss_out, cnt_out = pl.pallas_call(
            _make_mean_kernel(tm, steps, rows, needs_mask),
            out_shape=(jax.ShapeDtypeStruct((np_, 1, LANE), jnp.float32),
                       jax.ShapeDtypeStruct((np_, 1, LANE), jnp.float32)),
            grid=grid,
            in_specs=[data_spec, data_spec],
            out_specs=(out_spec, out_spec),
            scratch_shapes=[pltpu.VMEM((tm, LANE), jnp.float32),
                            pltpu.VMEM((tm, LANE), jnp.float32)],
            compiler_params=cparams,
            cost_estimate=pl.CostEstimate(flops=14 * rows * LANE, transcendentals=0,
                                          bytes_accessed=elem_bytes * rows * LANE),
        )(yt2, yp2)
        # Tiny final reduction (np_*128 values each) in plain JAX.
        return jnp.sum(loss_out) / jnp.sum(cnt_out)

    # Per-row weight broadcast to per-element so the weighted path stays lane-dense.
    # TODO(synk): a per-sample lane-reduce + small dot could avoid materializing this (N, C)
    # weight array, but loses lane density when C << 128; keep the simple lane-dense form.
    w_full = jnp.broadcast_to(sample_weight.astype(jnp.float32)[:, None], (N, C))
    w2 = _flat_lane_view(w_full, total, 0.0)

    loss_out = pl.pallas_call(
        _make_weighted_kernel(tm, steps, rows, needs_mask),
        out_shape=jax.ShapeDtypeStruct((np_, 1, LANE), jnp.float32),
        grid=grid,
        in_specs=[data_spec, data_spec, data_spec],
        out_specs=out_spec,
        scratch_shapes=[pltpu.VMEM((tm, LANE), jnp.float32)],
        compiler_params=cparams,
        cost_estimate=pl.CostEstimate(flops=16 * rows * LANE, transcendentals=0,
                                      bytes_accessed=(elem_bytes + 4) * rows * LANE),
    )(yt2, yp2, w2)
    return jnp.sum(loss_out)


# ----------------------------------------------------------------------------- reference
def labeled_loss_ref(lb_pred, y_train_lb, sample_weight=None):
    """Pure-JAX reference mirroring the PyTorch module."""
    finite = jnp.isfinite(lb_pred) & jnp.isfinite(y_train_lb)
    err = jnp.where(finite, lb_pred - y_train_lb, 0.0)
    abs_err = jnp.abs(err)
    loss = jnp.where(abs_err < THRESHOLD,
                     0.5 * err * err,
                     THRESHOLD * abs_err - 0.5 * THRESHOLD * THRESHOLD)
    loss = jnp.where(finite, loss, 0.0)
    if sample_weight is None:
        return jnp.sum(loss) / jnp.sum(finite.astype(jnp.float32))
    return jnp.sum(loss * sample_weight[:, None] * finite.astype(jnp.float32))


# ----------------------------------------------------------------------------- demo
if __name__ == "__main__":
    loss_fn = jax.jit(labeled_loss)

    def check(y_pred, y_true, w=None, rtol=1e-4, atol=1e-5):
        out = jax.block_until_ready(loss_fn(y_pred, y_true, w))
        ref = labeled_loss_ref(y_pred, y_true, w)
        assert jnp.allclose(out, ref, rtol=rtol, atol=atol), (out, ref)

    key = jax.random.PRNGKey(0)
    k1, k2, k3 = jax.random.split(key, 3)

    # Case 1: small (samples, labels) with injected non-finite entries.
    N, C = 16, 32
    y_pred = jax.random.normal(k1, (N, C), dtype=jnp.float32) * 2.0
    y_true = jax.random.normal(k2, (N, C), dtype=jnp.float32)
    sample_weight = jax.random.uniform(k3, (N,), dtype=jnp.float32) + 0.5
    y_pred = y_pred.at[0, 1].set(jnp.nan).at[3, 5].set(jnp.inf)
    y_true = y_true.at[2, 3].set(-jnp.inf)
    check(y_pred, y_true)
    check(y_pred, y_true, sample_weight)

    # Case 2: ragged total (N*C not a multiple of 128) -> exercises the tail-pad path.
    N2, C2 = 37, 23
    yp_r = jax.random.normal(jax.random.PRNGKey(1), (N2, C2), dtype=jnp.float32) * 3.0
    yt_r = jax.random.normal(jax.random.PRNGKey(2), (N2, C2), dtype=jnp.float32)
    yp_r = yp_r.at[5, 7].set(jnp.nan)
    w_r = jax.random.uniform(jax.random.PRNGKey(3), (N2,), dtype=jnp.float32)
    check(yp_r, yt_r)
    check(yp_r, yt_r, w_r)

    # Case 3: shape whose row count doesn't divide the tiling -> exercises the in-kernel
    # row mask, boundary blocks, and the 2-partial ("parallel") grid axis.
    N3, C3 = 100, 128
    yp_m = jax.random.normal(jax.random.PRNGKey(4), (N3, C3), dtype=jnp.float32) * 1.5
    yt_m = jax.random.normal(jax.random.PRNGKey(5), (N3, C3), dtype=jnp.float32)
    yp_m = yp_m.at[10, 100].set(jnp.inf)
    w_m = jax.random.uniform(jax.random.PRNGKey(6), (N3,), dtype=jnp.float32) + 0.1
    check(yp_m, yt_m)
    check(yp_m, yt_m, w_m)

    print("KERNEL_OK")
</pallas_src>

<mosaic_0001>
module attributes {stable_mosaic.version = 11 : i64} {
  func.func @kernel(%arg0: i32, %arg1: i32, %arg2: memref<4x128xf32, #tpu.memory_space<vmem>>, %arg3: memref<4x128xf32, #tpu.memory_space<vmem>>, %arg4: memref<1x1x128xf32, #tpu.memory_space<vmem>>, %arg5: memref<1x1x128xf32, #tpu.memory_space<vmem>>, %arg6: memref<4x128xf32, #tpu.memory_space<vmem>>, %arg7: memref<4x128xf32, #tpu.memory_space<vmem>>) attributes {dimension_semantics = [#tpu.dimension_semantics<parallel>, #tpu.dimension_semantics<arbitrary>], iteration_bounds = array<i64: 1, 1>, scalar_prefetch = 0 : i64, scratch_operands = 2 : i64, tpu.core_type = #tpu.core_type<tc>, window_params = [{transform_indices = @transform_0, window_bounds = array<i64: 4, 128>}, {transform_indices = @transform_1, window_bounds = array<i64: 4, 128>}, {transform_indices = @transform_2, window_bounds = array<i64: 1, 1, 128>}, {transform_indices = @transform_3, window_bounds = array<i64: 1, 1, 128>}]} {
    %c0_i32 = arith.constant 0 : i32
    %0 = arith.cmpi eq, %arg1, %c0_i32 : i32
    %1 = arith.extui %0 : i1 to i32
    %c0_i32_0 = arith.constant 0 : i32
    %2 = arith.cmpi ne, %1, %c0_i32_0 : i32
    scf.if %2 {
      %cst_19 = arith.constant 0.000000e+00 : f32
      %34 = vector.broadcast %cst_19 : f32 to vector<4x128xf32>
      %c0_20 = arith.constant 0 : index
      %c0_21 = arith.constant 0 : index
      %35 = vector.load %arg6[%c0_20, %c0_21] : memref<4x128xf32, #tpu.memory_space<vmem>>, vector<4x128xf32>
      tpu.vector_store %arg6[%c0_20, %c0_21], %34 {strides = array<i32>} : memref<4x128xf32, #tpu.memory_space<vmem>>, vector<4x128xf32>,
      %cst_22 = arith.constant 0.000000e+00 : f32
      %36 = vector.broadcast %cst_22 : f32 to vector<4x128xf32>
      %c0_23 = arith.constant 0 : index
      %c0_24 = arith.constant 0 : index
      %37 = vector.load %arg7[%c0_23, %c0_24] : memref<4x128xf32, #tpu.memory_space<vmem>>, vector<4x128xf32>
      tpu.vector_store %arg7[%c0_23, %c0_24], %36 {strides = array<i32>} : memref<4x128xf32, #tpu.memory_space<vmem>>, vector<4x128xf32>,
    } else {
    }
    %c0 = arith.constant 0 : index
    %c0_1 = arith.constant 0 : index
    %3 = vector.load %arg2[%c0, %c0_1] : memref<4x128xf32, #tpu.memory_space<vmem>>, vector<4x128xf32>
    %c0_2 = arith.constant 0 : index
    %c0_3 = arith.constant 0 : index
    %4 = vector.load %arg3[%c0_2, %c0_3] : memref<4x128xf32, #tpu.memory_space<vmem>>, vector<4x128xf32>
    %5 = tpu.weird %3 : vector<4x128xf32> -> vector<4x128xi1>
    %cst = arith.constant dense<true> : vector<4x128xi1>
    %6 = arith.xori %5, %cst : vector<4x128xi1>
    %7 = tpu.weird %4 : vector<4x128xf32> -> vector<4x128xi1>
    %cst_4 = arith.constant dense<true> : vector<4x128xi1>
    %8 = arith.xori %7, %cst_4 : vector<4x128xi1>
    %9 = arith.andi %6, %8 : vector<4x128xi1>
    %10 = arith.subf %4, %3 : vector<4x128xf32>
    %cst_5 = arith.constant 0.000000e+00 : f32
    %11 = vector.broadcast %cst_5 : f32 to vector<4x128xf32>
    %12 = arith.select %9, %10, %11 : vector<4x128xi1>, vector<4x128xf32>
    %13 = math.absf %12 : vector<4x128xf32>
    %cst_6 = arith.constant 1.000000e+00 : f32
    %14 = vector.broadcast %cst_6 : f32 to vector<4x128xf32>
    %15 = arith.minimumf %13, %14 : vector<4x128xf32>
    %cst_7 = arith.constant 5.000000e-01 : f32
    %16 = vector.broadcast %cst_7 : f32 to vector<4x128xf32>
    %17 = arith.mulf %16, %15 : vector<4x128xf32>
    %18 = arith.mulf %17, %15 : vector<4x128xf32>
    %19 = arith.subf %13, %15 : vector<4x128xf32>
    %cst_8 = arith.constant 1.000000e+00 : f32
    %20 = vector.broadcast %cst_8 : f32 to vector<4x128xf32>
    %21 = arith.mulf %20, %19 : vector<4x128xf32>
    %22 = arith.addf %18, %21 : vector<4x128xf32>
    %c0_9 = arith.constant 0 : index
    %c0_10 = arith.constant 0 : index
    %23 = vector.load %arg6[%c0_9, %c0_10] : memref<4x128xf32, #tpu.memory_space<vmem>>, vector<4x128xf32>
    %24 = arith.addf %23, %22 : vector<4x128xf32>
    %c0_11 = arith.constant 0 : index
    %c0_12 = arith.constant 0 : index
    %25 = vector.load %arg6[%c0_11, %c0_12] : memref<4x128xf32, #tpu.memory_space<vmem>>, vector<4x128xf32>
    tpu.vector_store %arg6[%c0_11, %c0_12], %24 {strides = array<i32>} : memref<4x128xf32, #tpu.memory_space<vmem>>, vector<4x128xf32>,
    %c0_13 = arith.constant 0 : index
    %c0_14 = arith.constant 0 : index
    %26 = vector.load %arg7[%c0_13, %c0_14] : memref<4x128xf32, #tpu.memory_space<vmem>>, vector<4x128xf32>
    %27 = arith.extui %9 : vector<4x128xi1> to vector<4x128xi32>
    %28 = arith.sitofp %27 : vector<4x128xi32> to vector<4x128xf32>
    %29 = arith.addf %26, %28 : vector<4x128xf32>
    %c0_15 = arith.constant 0 : index
    %c0_16 = arith.constant 0 : index
    %30 = vector.load %arg7[%c0_15, %c0_16] : memref<4x128xf32, #tpu.memory_space<vmem>>, vector<4x128xf32>
    tpu.vector_store %arg7[%c0_15, %c0_16], %29 {strides = array<i32>} : memref<4x128xf32, #tpu.memory_space<vmem>>, vector<4x128xf32>,
    %c0_i32_17 = arith.constant 0 : i32
    %31 = arith.cmpi eq, %arg1, %c0_i32_17 : i32
    %32 = arith.extui %31 : i1 to i32
    %c0_i32_18 = arith.constant 0 : i32
    %33 = arith.cmpi ne, %32, %c0_i32_18 : i32
    scf.if %33 {
      %c0_19 = arith.constant 0 : index
      %c0_20 = arith.constant 0 : index
      %34 = vector.load %arg6[%c0_19, %c0_20] : memref<4x128xf32, #tpu.memory_space<vmem>>, vector<4x128xf32>
      %cst_21 = arith.constant dense<0.000000e+00> : vector<128xf32>
      %35 = vector.multi_reduction <add>, %34, %cst_21 [0] : vector<4x128xf32> to vector<128xf32>
      %36 = vector.shape_cast %35 : vector<128xf32> to vector<1x128xf32>
      %37 = vector.shape_cast %36 : vector<1x128xf32> to vector<1x1x128xf32>
      %c0_22 = arith.constant 0 : index
      %c0_23 = arith.constant 0 : index
      %c0_24 = arith.constant 0 : index
      %38 = vector.load %arg4[%c0_22, %c0_23, %c0_24] : memref<1x1x128xf32, #tpu.memory_space<vmem>>, vector<1x1x128xf32>
      tpu.vector_store %arg4[%c0_22, %c0_23, %c0_24], %37 {strides = array<i32>} : memref<1x1x128xf32, #tpu.memory_space<vmem>>, vector<1x1x128xf32>,
      %c0_25 = arith.constant 0 : index
      %c0_26 = arith.constant 0 : index
      %39 = vector.load %arg7[%c0_25, %c0_26] : memref<4x128xf32, #tpu.memory_space<vmem>>, vector<4x128xf32>
      %cst_27 = arith.constant dense<0.000000e+00> : vector<128xf32>
      %40 = vector.multi_reduction <add>, %39, %cst_27 [0] : vector<4x128xf32> to vector<128xf32>
      %41 = vector.shape_cast %40 : vector<128xf32> to vector<1x128xf32>
      %42 = vector.shape_cast %41 : vector<1x128xf32> to vector<1x1x128xf32>
      %c0_28 = arith.constant 0 : index
      %c0_29 = arith.constant 0 : index
      %c0_30 = arith.constant 0 : index
      %43 = vector.load %arg5[%c0_28, %c0_29, %c0_30] : memref<1x1x128xf32, #tpu.memory_space<vmem>>, vector<1x1x128xf32>
      tpu.vector_store %arg5[%c0_28, %c0_29, %c0_30], %42 {strides = array<i32>} : memref<1x1x128xf32, #tpu.memory_space<vmem>>, vector<1x1x128xf32>,
    } else {
    }
    return
  }
  func.func @transform_0(%arg0: i32, %arg1: i32) -> (i32, i32) {
    %c1_i32 = arith.constant 1 : i32
    %0 = arith.muli %arg0, %c1_i32 : i32
    %1 = arith.addi %0, %arg1 : i32
    %c0_i32 = arith.constant 0 : i32
    %2 = arith.minsi %1, %c0_i32 : i32
    %c0_i32_0 = arith.constant 0 : i32
    %c0_i32_1 = arith.constant 0 : i32
    return %2, %c0_i32_0 : i32, i32
  }
  func.func @transform_1(%arg0: i32, %arg1: i32) -> (i32, i32) {
    %c1_i32 = arith.constant 1 : i32
    %0 = arith.muli %arg0, %c1_i32 : i32
    %1 = arith.addi %0, %arg1 : i32
    %c0_i32 = arith.constant 0 : i32
    %2 = arith.minsi %1, %c0_i32 : i32
    %c0_i32_0 = arith.constant 0 : i32
    %c0_i32_1 = arith.constant 0 : i32
    return %2, %c0_i32_0 : i32, i32
  }
  func.func @transform_2(%arg0: i32, %arg1: i32) -> (i32, i32, i32) {
    %c0_i32 = arith.constant 0 : i32
    %c0_i32_0 = arith.constant 0 : i32
    %c0_i32_1 = arith.constant 0 : i32
    return %arg0, %c0_i32, %c0_i32_0 : i32, i32, i32
  }
  func.func @transform_3(%arg0: i32, %arg1: i32) -> (i32, i32, i32) {
    %c0_i32 = arith.constant 0 : i32
    %c0_i32_0 = arith.constant 0 : i32
    %c0_i32_1 = arith.constant 0 : i32
    return %arg0, %c0_i32, %c0_i32_0 : i32, i32, i32
  }
}

</mosaic_0001>

<bundles_post_ra>
// kernel: labeled_loss.1
= control target key start
LH: loop header
LB: loop body
LE: loop exit
PB: predicated region body
PF: predicated region fallthrough
CT: control target
= control target key end

     0   :  { %v141_v0 = vmov 0.0   ;;  %vm142_vm2 = vmmov 1   ;;  %vm100_vm6 = vcmask 1043456   ;;  %s175_s0 = inlined_call_operand.vmem [shape: f32[4,128], index: 0, kind: input, shape index: {}]   ;;  %s176_s1 = inlined_call_operand.vmem [shape: f32[4,128], index: 1, kind: input, shape index: {}]   ;;  %s177_s3 = inlined_call_operand.vmem [shape: f32[1,1,128], index: 3, kind: output, shape index: {1}]   ;;  %s178_s2 = inlined_call_operand.vmem [shape: f32[1,1,128], index: 2, kind: output, shape index: {0}]  }
   0x1   :  { %72 = vst [vmem:[#allocation3] sm:$0xf] %v141_v0  ;;  %v73_v1 = vld [vmem:[%s175_s0] sm:$0xf] }
   0x2   :  { %v74_v2 = vld [vmem:[%s176_s1] sm:$0xf]  ;;  %71 = vst [vmem:[#allocation2] sm:$0xf] %v141_v0  ;;  %vm75_vm0 = vweird.f32 %v73_v1 }
   0x3   :  { %vm77_vm1 = vweird.f32 %v74_v2  ;;  %v80_v3 = vsub.f32 %v74_v2, %v73_v1  ;;  %vm76_vm3 = vmxor %vm75_vm0, %vm142_vm2 }
   0x4   :  { %vm78_vm4 = vmxor %vm77_vm1, %vm142_vm2 }
   0x5   :  { %vm79_vm5 = vmand %vm76_vm3, %vm78_vm4 }
   0x6   :  { %v81_v4 = vsel %vm79_vm5, %v80_v3, 0.0  ;;  %v138_v5 = vsel %vm79_vm5, 1.0, %v141_v0 }
   0x7   :  { %v82_v6 = vand.u32 2147483647, %v81_v4 }
   0x8   :  { %v91_v7 = vld [vmem:[#allocation3] sm:$0xf] }
   0x9   :  { %v83_v8 = vmin.f32 %v82_v6, 1.0  ;;  %v94_v9 = vadd.f32 %v138_v5, %v91_v7  ;;  %v88_v13 = vld [vmem:[#allocation2] sm:$0xf] }
   0xb   :  { %95 = vst [vmem:[#allocation3] sm:$0xf] %v94_v9  ;;  %v84_v10 = vmul.f32 0.5, %v83_v8  ;;  %v86_v11 = vsub.f32 %v82_v6, %v83_v8 }
   0xd   :  { %v85_v12 = vmul.f32 %v84_v10, %v83_v8 }
   0xf   :  { %v87_v14 = vadd.f32 %v86_v11, %v85_v12 }
  0x11   :  { %v89_v15 = vadd.f32 %v88_v13, %v87_v14 }
  0x12   :  { %v109_v16 = vld [vmem:[#allocation3] sm:$0xf] }
  0x13   :  { %90 = vst [vmem:[#allocation2] sm:$0xf] %v89_v15  ;;  %v110_v17 = vsel %vm100_vm6, %v109_v16, 0.0 }
  0x14   :  { %v111_v18 = vrot.slane %v110_v17, 4 }
  0x16   :  { %v112_v19 = vadd.f32 %v111_v18, %v110_v17 }
  0x18   :  { %v113_v20 = vrot.slane %v112_v19, 2 }
  0x1a   :  { %v114_v21 = vadd.f32 %v113_v20, %v112_v19  ;;  %v99_v22 = vld [vmem:[#allocation2] sm:$0xf] }
  0x1b   :  { %v101_v23 = vsel %vm100_vm6, %v99_v22, 0.0 }
  0x1c   :  { %v115_v24 = vrot.slane %v114_v21, 1  ;;  %v102_v25 = vrot.slane %v101_v23, 4 }
  0x1e   :  { %v116_v26 = vadd.f32 %v115_v24, %v114_v21  ;;  %v103_v27 = vadd.f32 %v102_v25, %v101_v23 }
  0x20   :  { %117 = vst [vmem:[%s177_s3] sm:$0x1] %v116_v26  ;;  %v104_v28 = vrot.slane %v103_v27, 2 }
  0x22   :  { %v105_v29 = vadd.f32 %v104_v28, %v103_v27 }
  0x24   :  { %v106_v30 = vrot.slane %v105_v29, 1 }
  0x26   :  { %v107_v31 = vadd.f32 %v106_v30, %v105_v29 }
  0x28   :  { %108 = vst [vmem:[%s178_s2] sm:$0x1] %v107_v31 }

</bundles_post_ra>
